<compile_context>
chip_gen: v5e
topology: v5e:2x2
jax: 0.10.0
libtpu: 0.0.40
codegen_flags: <defaults>
</compile_context>

<pallas_src>
import functools

import jax
import jax.numpy as jnp
from jax import lax
from jax.experimental import pallas as pl
from jax.experimental.pallas import tpu as pltpu

_LANE = 128
_SUB = 8
_ALIGN = _SUB * _LANE  # 1024 elements = one (8,128) f32 vreg
# 4096 rows x 128 lanes x 4B = 2 MiB per input per block.
# 2 inputs x 2 pipeline buffers x 2 MiB = 8 MiB: fits the default scoped VMEM
# on v5e (16 MiB), v6e (32 MiB) and v7x (32 MiB) with headroom, while hitting
# ~86% of HBM roofline for a mem-bound f32 stream on v6e.
_BLOCK_ROWS = 4096
# Below this many rows (512 KiB/input) launch overhead dominates bandwidth,
# so we take the single-block in-kernel-reduce fast path instead of splitting.
_SPLIT_MIN_ROWS = 1024


def _smooth_l1_term(x_ref, y_ref):
    # Subtract in the input dtype, then cast (matches PyTorch `(x-y).float()`).
    z = (x_ref[...] - y_ref[...]).astype(jnp.float32)
    az = jnp.abs(z)
    # Single-select smooth-L1:
    #   0.5*z^2           where |z| <  0.01
    #   0.01*(|z|-0.005)  where |z| >= 0.01
    return jnp.where(az < 0.01, 0.5 * z * z, 0.01 * (az - 0.005))


def _partials_kernel(x_ref, y_ref, part_ref, *, block_rows, m_rows):
    """Multi-block path: each grid step emits one (8,128) f32 partial sum."""
    term = _smooth_l1_term(x_ref, y_ref)

    def _store(t):
        # Tile-aligned reshape (no VMEM copy) + leading-axis reduce: pure
        # vreg-wise VALU adds, no per-step cross-lane XLU work.
        part_ref[0, :, :] = t.reshape(block_rows // _SUB, _SUB, _LANE).sum(axis=0)

    if m_rows % block_rows != 0:
        # Only the LAST block sees rows past the real array; gate the mask
        # there so every other step stays free of iota/cmp/select filler.
        i = pl.program_id(0)
        last = pl.num_programs(0) - 1

        @pl.when(i != last)
        def _():
            _store(term)

        @pl.when(i == last)
        def _():
            row = lax.broadcasted_iota(jnp.int32, (block_rows, _LANE), 0)
            # `where` select semantics: garbage/NaN rows beyond m_rows are
            # replaced by 0 without propagating.
            _store(jnp.where((i * block_rows + row) < m_rows, term, 0.0))
    else:
        _store(term)


def _single_block_kernel(x_ref, y_ref, out_ref, *, inv_n):
    """Single-block fast path: full reduce + divide by true n in-kernel."""
    term = _smooth_l1_term(x_ref, y_ref)
    out_ref[...] = (jnp.sum(term) * inv_n).reshape(1, 1)


def smooth_l1_loss(x, y):
    assert x.shape == y.shape
    n = x.size
    xf = jnp.ravel(x)  # free bitcast for contiguous inputs
    yf = jnp.ravel(y)

    aligned = (n // _ALIGN) * _ALIGN
    tail = n - aligned

    if aligned == 0:
        # Entire input is smaller than one (8,128) tile: pad the tiny slab
        # (zero padding contributes exactly 0; we still divide by the true n).
        pad = _ALIGN - n
        xk = jnp.concatenate([xf, jnp.zeros((pad,), xf.dtype)])
        yk = jnp.concatenate([yf, jnp.zeros((pad,), yf.dtype)])
        tail = 0
    elif tail:
        # Kernel consumes the 1024-aligned prefix; the <1024-element tail is
        # folded in with plain jnp below (negligible vs. the main stream).
        # TODO(synk): a fully copy-free unaligned path would DMA the ragged
        # tail from a pl.ANY HBM ref instead of slicing the prefix here.
        xk = lax.slice(xf, (0,), (aligned,))
        yk = lax.slice(yf, (0,), (aligned,))
    else:
        xk, yk = xf, yf

    m = xk.size // _LANE  # guaranteed multiple of 8
    x2 = xk.reshape(m, _LANE)
    y2 = yk.reshape(m, _LANE)
    inv_n = 1.0 / float(n)

    if m <= _SPLIT_MIN_ROWS:
        # --- Small-input fast path: one block, reduction finished in-kernel.
        out = pl.pallas_call(
            functools.partial(_single_block_kernel, inv_n=inv_n),
            out_shape=jax.ShapeDtypeStruct((1, 1), jnp.float32),
            grid_spec=pltpu.PrefetchScalarGridSpec(
                num_scalar_prefetch=0,
                grid=(1,),
                in_specs=[
                    pl.BlockSpec((m, _LANE), lambda i: (0, 0)),
                    pl.BlockSpec((m, _LANE), lambda i: (0, 0)),
                ],
                out_specs=pl.BlockSpec((1, 1), lambda i: (0, 0)),
            ),
            compiler_params=pltpu.CompilerParams(
                dimension_semantics=("arbitrary",),
            ),
        )(x2, y2)
        loss = out[0, 0]
    else:
        # --- Streaming path: big auto-pipelined blocks, one partial per step.
        block_rows = min(_BLOCK_ROWS, m)
        if block_rows == m:
            # Force >= 2 grid steps so the "parallel" axis can shard across
            # v7x's two TensorCores (both must stream to reach 3.2 TB/s).
            # TODO(synk): if megacore sharding doesn't kick in via
            # dimension_semantics on v7x, switch to pltpu.CORE_PARALLEL.
            block_rows = ((m // 2) + _SUB - 1) // _SUB * _SUB
        num_blocks = pl.cdiv(m, block_rows)

        partials = pl.pallas_call(
            functools.partial(_partials_kernel, block_rows=block_rows, m_rows=m),
            out_shape=jax.ShapeDtypeStruct((num_blocks, _SUB, _LANE), jnp.float32),
            grid_spec=pltpu.PrefetchScalarGridSpec(
                num_scalar_prefetch=0,
                grid=(num_blocks,),
                in_specs=[
                    pl.BlockSpec((block_rows, _LANE), lambda i: (i, 0)),
                    pl.BlockSpec((block_rows, _LANE), lambda i: (i, 0)),
                ],
                # Lane-dense (1,8,128) output block: unmasked vst writeback.
                out_specs=pl.BlockSpec((1, _SUB, _LANE), lambda i: (i, 0, 0)),
            ),
            compiler_params=pltpu.CompilerParams(
                # Each step writes its own partial block (no carried state),
                # so this axis is safe to shard across TensorCores.
                dimension_semantics=("parallel",),
            ),
            cost_estimate=pl.CostEstimate(
                flops=8 * m * _LANE,
                transcendentals=0,
                bytes_accessed=2 * x2.dtype.itemsize * m * _LANE
                + 4 * num_blocks * _SUB * _LANE,
            ),
        )(x2, y2)
        # Tiny final tree reduce outside the kernel (f32; partials array is
        # small so summation error stays negligible), divide by the TRUE n.
        loss = jnp.sum(partials) * jnp.float32(inv_n)

    if tail:
        # Ragged tail (< 1024 elements): plain jnp, same formula, same f32 math.
        xt = lax.slice(xf, (aligned,), (n,))
        yt = lax.slice(yf, (aligned,), (n,))
        zt = (xt - yt).astype(jnp.float32)
        azt = jnp.abs(zt)
        tt = jnp.where(azt < 0.01, 0.5 * zt * zt, 0.01 * (azt - 0.005))
        loss = loss + jnp.sum(tt) * jnp.float32(inv_n)

    return loss


def _reference(x, y):
    # Mirrors the PyTorch module exactly (masked two-branch formulation).
    z = (x - y).astype(jnp.float32)
    az = jnp.abs(z)
    mse_mask = (az < 0.01).astype(jnp.float32)
    l1_mask = (az >= 0.01).astype(jnp.float32)
    mse = mse_mask * z
    l1 = l1_mask * z
    return jnp.mean(0.5 * mse * mse * mse_mask) + jnp.mean(
        0.01 * (jnp.abs(l1) - 0.005) * l1_mask
    )


if __name__ == "__main__":
    key = jax.random.PRNGKey(0)
    kx, ky = jax.random.split(key)
    # NCHW inputs, same shape for x and y.
    shape = (2, 4, 16, 16)
    # Scale so that both branches (|z| < 0.01 and |z| >= 0.01) are exercised.
    x = jax.random.normal(kx, shape, dtype=jnp.float32) * 0.02
    y = jax.random.normal(ky, shape, dtype=jnp.float32) * 0.02

    loss = smooth_l1_loss(x, y)
    jax.block_until_ready(loss)

    ref = _reference(x, y)
    assert jnp.allclose(loss, ref, rtol=1e-5, atol=1e-7), (loss, ref)
    print("KERNEL_OK")
</pallas_src>

<mosaic_0001>
module attributes {stable_mosaic.version = 11 : i64} {
  func.func @_single_block_kernel(%arg0: i32, %arg1: memref<16x128xf32, #tpu.memory_space<vmem>>, %arg2: memref<16x128xf32, #tpu.memory_space<vmem>>, %arg3: memref<1x1xf32, #tpu.memory_space<vmem>>) attributes {dimension_semantics = [#tpu.dimension_semantics<arbitrary>], iteration_bounds = array<i64: 1>, scalar_prefetch = 0 : i64, scratch_operands = 0 : i64, tpu.core_type = #tpu.core_type<tc>, window_params = [{pipeline_mode = #tpu.pipeline_mode<synchronous>, transform_indices = @transform_0, window_bounds = array<i64: 16, 128>}, {pipeline_mode = #tpu.pipeline_mode<synchronous>, transform_indices = @transform_1, window_bounds = array<i64: 16, 128>}, {pipeline_mode = #tpu.pipeline_mode<synchronous>, transform_indices = @transform_2, window_bounds = array<i64: 1, 1>}]} {
    %c0 = arith.constant 0 : index
    %c0_0 = arith.constant 0 : index
    %0 = vector.load %arg1[%c0, %c0_0] : memref<16x128xf32, #tpu.memory_space<vmem>>, vector<16x128xf32>
    %c0_1 = arith.constant 0 : index
    %c0_2 = arith.constant 0 : index
    %1 = vector.load %arg2[%c0_1, %c0_2] : memref<16x128xf32, #tpu.memory_space<vmem>>, vector<16x128xf32>
    %2 = arith.subf %0, %1 : vector<16x128xf32>
    %3 = math.absf %2 : vector<16x128xf32>
    %cst = arith.constant 0.00999999977 : f32
    %4 = vector.broadcast %cst : f32 to vector<16x128xf32>
    %5 = arith.cmpf olt, %3, %4 : vector<16x128xf32>
    %cst_3 = arith.constant 5.000000e-01 : f32
    %6 = vector.broadcast %cst_3 : f32 to vector<16x128xf32>
    %7 = arith.mulf %6, %2 : vector<16x128xf32>
    %8 = arith.mulf %7, %2 : vector<16x128xf32>
    %cst_4 = arith.constant 5.000000e-03 : f32
    %9 = vector.broadcast %cst_4 : f32 to vector<16x128xf32>
    %10 = arith.subf %3, %9 : vector<16x128xf32>
    %cst_5 = arith.constant 0.00999999977 : f32
    %11 = vector.broadcast %cst_5 : f32 to vector<16x128xf32>
    %12 = arith.mulf %11, %10 : vector<16x128xf32>
    %13 = arith.select %5, %8, %12 : vector<16x128xi1>, vector<16x128xf32>
    %14 = vector.shape_cast %13 : vector<16x128xf32> to vector<1x16x128xf32>
    %cst_6 = arith.constant dense<0.000000e+00> : vector<1xf32>
    %15 = vector.multi_reduction <add>, %14, %cst_6 [1, 2] : vector<1x16x128xf32> to vector<1xf32>
    %16 = vector.shape_cast %15 : vector<1xf32> to vector<1x1x1xf32>
    %17 = vector.extract %16[0, 0, 0] : f32 from vector<1x1x1xf32>
    %cst_7 = arith.constant 4.8828125E-4 : f32
    %18 = arith.mulf %17, %cst_7 : f32
    %19 = vector.broadcast %18 : f32 to vector<1x1xf32>
    %c0_8 = arith.constant 0 : index
    %c0_9 = arith.constant 0 : index
    %20 = vector.load %arg3[%c0_8, %c0_9] : memref<1x1xf32, #tpu.memory_space<vmem>>, vector<1x1xf32>
    tpu.vector_store %arg3[%c0_8, %c0_9], %19 {strides = array<i32>} : memref<1x1xf32, #tpu.memory_space<vmem>>, vector<1x1xf32>,
    return
  }
  func.func @transform_0(%arg0: i32) -> (i32, i32) {
    %c0_i32 = arith.constant 0 : i32
    %c0_i32_0 = arith.constant 0 : i32
    %c0_i32_1 = arith.constant 0 : i32
    return %c0_i32, %c0_i32_0 : i32, i32
  }
  func.func @transform_1(%arg0: i32) -> (i32, i32) {
    %c0_i32 = arith.constant 0 : i32
    %c0_i32_0 = arith.constant 0 : i32
    %c0_i32_1 = arith.constant 0 : i32
    return %c0_i32, %c0_i32_0 : i32, i32
  }
  func.func @transform_2(%arg0: i32) -> (i32, i32) {
    %c0_i32 = arith.constant 0 : i32
    %c0_i32_0 = arith.constant 0 : i32
    %c0_i32_1 = arith.constant 0 : i32
    return %c0_i32, %c0_i32_0 : i32, i32
  }
}

</mosaic_0001>

<bundles_post_ra>
// kernel: tpu_custom_call.1
= control target key start
LH: loop header
LB: loop body
LE: loop exit
PB: predicated region body
PF: predicated region fallthrough
CT: control target
= control target key end

     0   :  { %7 = vsyncpa [#allocation3], 0  ;;  %s212_s0 = inlined_call_operand.hbm [shape: f32[16,128], index: 0, kind: input, shape index: {}]   ;;  %s213_s1 = inlined_call_operand.hbm [shape: f32[16,128], index: 1, kind: input, shape index: {}]   ;;  %s214_s2 = inlined_call_operand.hbm [shape: f32[1,1], index: 2, kind: output, shape index: {}]  }
   0x1   :  { %8 = vsyncpa [#allocation6], 0 }
   0x2   :  { %9 = vsyncpa [#allocation4], 0  ;;  %s14_s11 = sshll.u32 %s212_s0, 4  ;;  %s183_s12 = smov [#allocation2]   ;;  %s15_s11 = int_to_ptr.hbm [resolvable:$true] %s14_s11 }
   0x3   :  { %s16_s13 = sshll.u32 %s183_s12, 4  ;;  %s27_s16 = sshll.u32 %s213_s1, 4  ;;  %s17_s13 = int_to_ptr.vmem [resolvable:$true] %s16_s13  ;;  %s28_s16 = int_to_ptr.hbm [resolvable:$true] %s27_s16 }
   0x4   :  { %s184_s17 = smov 128   ;;  %s185_s18 = smov 8  }
   0x5   :  { %22 = dma.hbm_to_vmem [thread:$0]  %s15_s11, 256, %s17_s13, [#allocation3], %s184_s17, %s184_s17, %s185_s18  }
   0x6   :  { %s186_s19 = smov [#allocation5]  }
   0x7   :  { %s29_s20 = sshll.u32 %s186_s19, 4  ;;  %s30_s20 = int_to_ptr.vmem [resolvable:$true] %s29_s20 }
   0x8   :  { %35 = dma.hbm_to_vmem [thread:$0]  %s28_s16, 256, %s30_s20, [#allocation6], %s184_s17, %s184_s17, %s185_s18  }
   0x9   :  { %177 = dma.done.wait [#allocation3], 256  }
   0xa   :  { %178 = vsyncadd [#allocation3], 4294967040 }
   0xb   :  { %179 = dma.done.wait [#allocation6], 256  }
   0xc   :  { %180 = vsyncadd [#allocation6], 4294967040  ;;  %v44_v0 = vld [vmem:[#allocation2] sm:$0xff]  ;;  %v45_v1 = vld [vmem:[#allocation2 + $0x8] sm:$0xff]  ;;  %s187_s0 = smov [#allocation7]   ;;  %s85_s23 = sshll.u32 %s214_s2, 4  ;;  %s86_s23 = int_to_ptr.hbm [resolvable:$true] %s85_s23 }
   0xd   :  { %v46_v2 = vld [vmem:[#allocation5] sm:$0xff]  ;;  %v47_v3 = vld [vmem:[#allocation5 + $0x8] sm:$0xff]  ;;  %s83_s1 = sshll.u32 %s187_s0, 4  ;;  %vm76_vm2 = vcmask 0   ;;  %s84_s1 = int_to_ptr.vmem [resolvable:$true] %s83_s1 }
   0xe   :  { %v48_v4 = vsub.f32 %v44_v0, %v46_v2  ;;  %v49_v5 = vsub.f32 %v45_v1, %v47_v3 }
  0x10   :  { %v50_v6 = vand.u32 2147483647, %v48_v4  ;;  %v54_v7 = vmul.f32 0.5, %v48_v4  ;;  %v51_v8 = vand.u32 2147483647, %v49_v5  ;;  %v55_v9 = vmul.f32 0.5, %v49_v5 }
  0x12   :  { %v56_v10 = vmul.f32 %v54_v7, %v48_v4  ;;  %v96_v11 = vadd.f32 -0.005, %v50_v6  ;;  %vm52_vm0 = vcmp.lt.f32.partialorder %v50_v6, 0.01  ;;  %v57_v12 = vmul.f32 %v55_v9, %v49_v5 }
  0x13   :  { %v97_v13 = vadd.f32 -0.005, %v51_v8  ;;  %vm53_vm1 = vcmp.lt.f32.partialorder %v51_v8, 0.01 }
  0x14   :  { %v60_v14 = vmul.f32 0.01, %v96_v11 }
  0x15   :  { %v61_v15 = vmul.f32 0.01, %v97_v13 }
  0x16   :  { %v62_v16 = vsel %vm52_vm0, %v56_v10, %v60_v14 }
  0x17   :  { %v63_v17 = vsel %vm53_vm1, %v57_v12, %v61_v15 }
  0x18   :  { %v64_v18 = vadd.f32 %v63_v17, %v62_v16 }
  0x1a   :  { %65 = vadd.xlane.f32.xlu0 %v64_v18 }
  0x8d   :  { %v66_v19 = vpop.xlane.xlu0 %65 }
  0x8e   :  { %v67_v20 = vrot.slane %v66_v19, 4 }
  0x90   :  { %v68_v21 = vadd.f32 %v67_v20, %v66_v19 }
  0x92   :  { %v69_v22 = vrot.slane %v68_v21, 2 }
  0x94   :  { %v70_v23 = vadd.f32 %v69_v22, %v68_v21 }
  0x96   :  { %v71_v24 = vrot.slane %v70_v23, 1 }
  0x98   :  { %v72_v25 = vadd.f32 %v71_v24, %v70_v23 }
  0x9a   :  { %98 = vpush %v72_v25 }
  0xcb   :  { %s99_s24 = spop %98 }
  0xcc   :  { %s74_s25 = smul.f32 0.00048828125, %s99_s24 }
  0xce   :  { %v75_v26 = vstv %s74_s25 }
  0xcf   :  { %77 = vst.msk [vmem:[#allocation7] sm:$0x1] %vm76_vm2, %v75_v26 }
  0xd0   :  { %88 = dma.vmem_to_hbm [thread:$0]  %s84_s1, 16, %s86_s23, [#allocation4]  }
  0xd1   :  { %181 = dma.done.wait [#allocation4], 16  }
  0xd2   :  { %182 = vsyncadd [#allocation4], 4294967280 }
  0xd3   :  { %93 = vsyncpa [#allocation3], 1 }
  0xd4   :  { %94 = vsyncpa [#allocation6], 1 }
  0xd5   :  { %95 = vsyncpa [#allocation4], 1 }

</bundles_post_ra>
